<compile_context>
chip_gen: v5e
topology: v5e:2x2
jax: 0.10.0
libtpu: 0.0.40
codegen_flags: <defaults>
</compile_context>

<pallas_src>
import functools

import jax
import jax.numpy as jnp
from jax.experimental import pallas as pl
from jax.experimental.pallas import tpu as pltpu

_LANE = 128            # TPU lane width (last-dim tiling unit)
_MIN_BLOCK_B = 16      # 16-aligned rows (bf16 sublane packing)
_MAX_BLOCK_B = 2048    # batch rows per grid step; working set ~few MiB << VMEM on v5e/v6e/v7x


def _round_up(x: int, m: int) -> int:
    return ((x + m - 1) // m) * m


def _cdiv(a: int, b: int) -> int:
    return -(-a // b)


def _choose_batch_tiling(batch: int, max_block_b: int):
    """Pick (block_b, b_pad).

    * tiles are balanced (<= max_block_b, 16-aligned) so padding never jumps
      by a whole tile when batch is just above the tile size;
    * when the batch is large enough (>= 2 tiles worth of rows) force an even
      step count >= 2 so v7x megacore can shard the grid and the pipeline can
      double-buffer input/output DMAs.
    """
    n_steps = max(1, _cdiv(batch, max_block_b))
    if batch >= 2 * _MIN_BLOCK_B:
        n_steps = max(n_steps, 2)
        if n_steps % 2:
            n_steps += 1
    block_b = _round_up(_cdiv(batch, n_steps), _MIN_BLOCK_B)
    b_pad = _round_up(batch, block_b)
    return block_b, b_pad


def _actor_ppo_fwd_kernel(x_ref, w1_ref, b1_ref, w2_ref, b2_ref, w3_ref, b3_ref,
                          o_ref):
    """Fused MLP forward + tanh for one (block_b, ...) batch tile.

    bf16 matmul operands, f32 MXU accumulation; bias add / ReLU / tanh in f32.
    Stores only the first action_dim columns (lane-narrow but full-array-dim).
    """
    cd = w1_ref.dtype
    act_dim = o_ref.shape[-1]
    x = x_ref[...].astype(cd)                          # cast folded into kernel (f32 state in HBM)
    # layer 1: Linear + ReLU
    h = jnp.dot(x, w1_ref[...], preferred_element_type=jnp.float32) + b1_ref[...]
    h = jnp.maximum(h, 0.0)
    # layer 2: Linear + ReLU
    h = jnp.dot(h.astype(cd), w2_ref[...], preferred_element_type=jnp.float32) + b2_ref[...]
    h = jnp.maximum(h, 0.0)
    # layer 3: Linear (padded output cols sliced away before bias/tanh/store)
    h = jnp.dot(h.astype(cd), w3_ref[...], preferred_element_type=jnp.float32)
    h = h[:, :act_dim] + b3_ref[...]
    # ActorPPO.forward: .tanh()
    o_ref[...] = jnp.tanh(h).astype(o_ref.dtype)


@functools.partial(jax.jit, static_argnames=("action_dim", "max_block_b"))
def actor_ppo_forward(state, params, *, action_dim, max_block_b=_MAX_BLOCK_B):
    """state: (B, state_dim) f32 -> action (B, action_dim) f32 in (-1, 1).

    `params` must come from `prepare_actor_ppo_params` (lane-padded, bf16 weights).
    """
    w1, b1, w2, b2, w3, b3 = params
    batch, state_dim = state.shape
    assert w1.shape[0] == state_dim
    mid_pad = w1.shape[1]
    act_pad = w3.shape[1]
    assert b3.shape[1] == action_dim and action_dim <= act_pad

    block_b, b_pad = _choose_batch_tiling(batch, max_block_b)

    x = state
    if b_pad != batch:
        x = jnp.pad(x, ((0, b_pad - batch), (0, 0)))

    out = pl.pallas_call(
        _actor_ppo_fwd_kernel,
        # Narrow (action_dim) output: 32x less HBM writeback than the 128-padded slab.
        out_shape=jax.ShapeDtypeStruct((b_pad, action_dim), jnp.float32),
        grid=(b_pad // block_b,),
        in_specs=[
            pl.BlockSpec((block_b, state_dim), lambda i: (i, 0)),  # x: tiled over batch
            pl.BlockSpec((state_dim, mid_pad), lambda i: (0, 0)),  # w1: VMEM-resident
            pl.BlockSpec((1, mid_pad), lambda i: (0, 0)),          # b1
            pl.BlockSpec((mid_pad, mid_pad), lambda i: (0, 0)),    # w2
            pl.BlockSpec((1, mid_pad), lambda i: (0, 0)),          # b2
            pl.BlockSpec((mid_pad, act_pad), lambda i: (0, 0)),    # w3 (cols lane-padded for MXU)
            pl.BlockSpec((1, action_dim), lambda i: (0, 0)),       # b3 (unpadded)
        ],
        out_specs=pl.BlockSpec((block_b, action_dim), lambda i: (i, 0)),
        compiler_params=pltpu.CompilerParams(
            dimension_semantics=("parallel",),     # megacore sharding on v7x (grid kept >=2, even)
            # Per-step working set is a few MiB even at block_b=2048; 32 MiB gives
            # ample headroom and fits every generation (v7x physical VMEM is 64 MiB,
            # so re-derive this if block_b or mid_dim ever grow substantially).
            vmem_limit_bytes=32 * 1024 * 1024,
        ),
    )(x, w1, b1, w2, b2, w3, b3)

    # Slice only trims padded batch rows (contiguous); skipped when unpadded.
    return out if b_pad == batch else out[:batch]


def init_actor_ppo_params(key, state_dim, mid_dim, action_dim):
    """nn.Linear-style init: uniform(+-1/sqrt(fan_in)); W stored (in_dim, out_dim)."""
    ks = jax.random.split(key, 6)

    def lin(kw, kb, fan_in, fan_out):
        bound = 1.0 / jnp.sqrt(jnp.float32(fan_in))
        w = jax.random.uniform(kw, (fan_in, fan_out), jnp.float32, -bound, bound)
        b = jax.random.uniform(kb, (1, fan_out), jnp.float32, -bound, bound)
        return w, b

    w1, b1 = lin(ks[0], ks[1], state_dim, mid_dim)
    w2, b2 = lin(ks[2], ks[3], mid_dim, mid_dim)
    w3, b3 = lin(ks[4], ks[5], mid_dim, action_dim)
    return (w1, b1, w2, b2, w3, b3)


def prepare_actor_ppo_params(params, compute_dtype=jnp.bfloat16):
    """Zero-pad hidden dims (and w3's output cols) to multiples of 128 lanes and
    cast weights to the matmul compute dtype.  Padding is exact: padded weight
    rows/cols and biases are zero, so padded hidden units are ReLU(0)=0; padded
    w3 output columns are sliced away inside the kernel before bias/tanh.
    Biases stay f32 (they add into the f32 accumulator); b3 stays unpadded.
    Do this once; re-use the result across calls."""
    w1, b1, w2, b2, w3, b3 = params
    state_dim, mid_dim = w1.shape
    action_dim = w3.shape[1]
    mid_pad = _round_up(mid_dim, _LANE)
    act_pad = _round_up(action_dim, _LANE)

    def pad2(a, rows, cols):
        return jnp.pad(a, ((0, rows - a.shape[0]), (0, cols - a.shape[1])))

    w1p = pad2(w1, state_dim, mid_pad).astype(compute_dtype)
    b1p = pad2(b1, 1, mid_pad).astype(jnp.float32)
    w2p = pad2(w2, mid_pad, mid_pad).astype(compute_dtype)
    b2p = pad2(b2, 1, mid_pad).astype(jnp.float32)
    w3p = pad2(w3, mid_pad, act_pad).astype(compute_dtype)
    b3p = b3.astype(jnp.float32)                      # (1, action_dim), unpadded
    return (w1p, b1p, w2p, b2p, w3p, b3p)


def _reference_forward_matched(state, prepared_params, action_dim):
    """Pure-JAX reference with identical precision choices (bf16 dots, f32 accum)."""
    w1, b1, w2, b2, w3, b3 = prepared_params
    cd = w1.dtype
    h = jnp.maximum(jnp.dot(state.astype(cd), w1, preferred_element_type=jnp.float32) + b1, 0.0)
    h = jnp.maximum(jnp.dot(h.astype(cd), w2, preferred_element_type=jnp.float32) + b2, 0.0)
    h = jnp.dot(h.astype(cd), w3, preferred_element_type=jnp.float32)[:, :action_dim] + b3
    return jnp.tanh(h)


def _reference_forward_f32(state, raw_params):
    """Full-precision reference of ActorPPO.forward (un-padded f32 params)."""
    w1, b1, w2, b2, w3, b3 = raw_params
    h = jnp.maximum(state @ w1 + b1, 0.0)
    h = jnp.maximum(h @ w2 + b2, 0.0)
    return jnp.tanh(h @ w3 + b3)


if __name__ == "__main__":
    # ActorPPO(mid_dim=32, num_layer=3, state_dim=16, action_dim=4)
    batch, state_dim, mid_dim, action_dim = 8, 16, 32, 4

    key = jax.random.PRNGKey(0)
    k_params, k_state, k_state2 = jax.random.split(key, 3)
    raw_params = init_actor_ppo_params(k_params, state_dim, mid_dim, action_dim)
    params = prepare_actor_ppo_params(raw_params)          # pad + cast once, reuse per call
    state = jax.random.normal(k_state, (batch, state_dim), jnp.float32)

    out = actor_ppo_forward(state, params, action_dim=action_dim)
    out = jax.block_until_ready(out)
    assert out.shape == (batch, action_dim)

    # Exact-precision-matched reference (bf16 dot operands, f32 accumulate).
    ref = _reference_forward_matched(state, params, action_dim)
    assert jnp.allclose(out, ref, atol=1e-4, rtol=1e-4), "mismatch vs matched reference"

    # Sanity vs. full-f32 reference (bf16 weight/input rounding -> loose tolerance).
    ref32 = _reference_forward_f32(state, raw_params)
    assert jnp.allclose(out, ref32, atol=5e-2, rtol=5e-2), "mismatch vs f32 reference"

    # Exercise the multi-step (grid >= 2, balanced-tile, batch-padded) path too.
    batch2 = 300
    state2 = jax.random.normal(k_state2, (batch2, state_dim), jnp.float32)
    out2 = jax.block_until_ready(actor_ppo_forward(state2, params, action_dim=action_dim))
    assert out2.shape == (batch2, action_dim)
    ref2 = _reference_forward_matched(state2, params, action_dim)
    assert jnp.allclose(out2, ref2, atol=1e-4, rtol=1e-4), "mismatch (multi-step path)"

    # TODO(synk): get_action / get_logprob / entropy are thin elementwise wrappers
    # around this MLP (plus torch.randn_like noise, done host-side with jax.random);
    # only the hot forward() path is kernelized here.  For tiny-batch inference the
    # remaining lever is fusing that elementwise work into this kernel / batching
    # more environments per call, not tuning the MLP further.
    print("KERNEL_OK")
</pallas_src>

<mosaic_0001>
module attributes {stable_mosaic.version = 11 : i64} {
  func.func @_actor_ppo_fwd_kernel(%arg0: i32, %arg1: memref<16x16xf32, #tpu.memory_space<vmem>>, %arg2: memref<16x128xbf16, #tpu.memory_space<vmem>>, %arg3: memref<1x128xf32, #tpu.memory_space<vmem>>, %arg4: memref<128x128xbf16, #tpu.memory_space<vmem>>, %arg5: memref<1x128xf32, #tpu.memory_space<vmem>>, %arg6: memref<128x128xbf16, #tpu.memory_space<vmem>>, %arg7: memref<1x4xf32, #tpu.memory_space<vmem>>, %arg8: memref<16x4xf32, #tpu.memory_space<vmem>>) attributes {dimension_semantics = [#tpu.dimension_semantics<parallel>], iteration_bounds = array<i64: 1>, scalar_prefetch = 0 : i64, scratch_operands = 0 : i64, tpu.core_type = #tpu.core_type<tc>, window_params = [{transform_indices = @transform_0, window_bounds = array<i64: 16, 16>}, {pipeline_mode = #tpu.pipeline_mode<synchronous>, transform_indices = @transform_1, window_bounds = array<i64: 16, 128>}, {pipeline_mode = #tpu.pipeline_mode<synchronous>, transform_indices = @transform_2, window_bounds = array<i64: 1, 128>}, {pipeline_mode = #tpu.pipeline_mode<synchronous>, transform_indices = @transform_3, window_bounds = array<i64: 128, 128>}, {pipeline_mode = #tpu.pipeline_mode<synchronous>, transform_indices = @transform_4, window_bounds = array<i64: 1, 128>}, {pipeline_mode = #tpu.pipeline_mode<synchronous>, transform_indices = @transform_5, window_bounds = array<i64: 128, 128>}, {pipeline_mode = #tpu.pipeline_mode<synchronous>, transform_indices = @transform_6, window_bounds = array<i64: 1, 4>}, {transform_indices = @transform_7, window_bounds = array<i64: 16, 4>}]} {
    %c0 = arith.constant 0 : index
    %c0_0 = arith.constant 0 : index
    %0 = vector.load %arg1[%c0, %c0_0] : memref<16x16xf32, #tpu.memory_space<vmem>>, vector<16x16xf32>
    %1 = arith.truncf %0 : vector<16x16xf32> to vector<16x16xbf16>
    %c0_1 = arith.constant 0 : index
    %c0_2 = arith.constant 0 : index
    %2 = vector.load %arg2[%c0_1, %c0_2] : memref<16x128xbf16, #tpu.memory_space<vmem>>, vector<16x128xbf16>
    %cst = arith.constant dense<0.000000e+00> : vector<16x128xf32>
    %3 = tpu.matmul %1, %2, %cst {dimension_numbers = #tpu.dot_dimension_numbers<[1], [0], [0], [1], [0, 0, 1, 1], [], []>} : vector<16x16xbf16>, vector<16x128xbf16>, vector<16x128xf32> -> vector<16x128xf32>
    %c0_3 = arith.constant 0 : index
    %c0_4 = arith.constant 0 : index
    %4 = vector.load %arg3[%c0_3, %c0_4] : memref<1x128xf32, #tpu.memory_space<vmem>>, vector<1x128xf32>
    %5 = vector.broadcast %4 : vector<1x128xf32> to vector<16x128xf32>
    %6 = arith.addf %3, %5 : vector<16x128xf32>
    %cst_5 = arith.constant 0.000000e+00 : f32
    %7 = vector.broadcast %cst_5 : f32 to vector<16x128xf32>
    %8 = arith.maximumf %6, %7 : vector<16x128xf32>
    %9 = arith.truncf %8 : vector<16x128xf32> to vector<16x128xbf16>
    %c0_6 = arith.constant 0 : index
    %c0_7 = arith.constant 0 : index
    %10 = vector.load %arg4[%c0_6, %c0_7] : memref<128x128xbf16, #tpu.memory_space<vmem>>, vector<128x128xbf16>
    %cst_8 = arith.constant dense<0.000000e+00> : vector<16x128xf32>
    %11 = tpu.matmul %9, %10, %cst_8 {dimension_numbers = #tpu.dot_dimension_numbers<[1], [0], [0], [1], [0, 0, 1, 1], [], []>} : vector<16x128xbf16>, vector<128x128xbf16>, vector<16x128xf32> -> vector<16x128xf32>
    %c0_9 = arith.constant 0 : index
    %c0_10 = arith.constant 0 : index
    %12 = vector.load %arg5[%c0_9, %c0_10] : memref<1x128xf32, #tpu.memory_space<vmem>>, vector<1x128xf32>
    %13 = vector.broadcast %12 : vector<1x128xf32> to vector<16x128xf32>
    %14 = arith.addf %11, %13 : vector<16x128xf32>
    %cst_11 = arith.constant 0.000000e+00 : f32
    %15 = vector.broadcast %cst_11 : f32 to vector<16x128xf32>
    %16 = arith.maximumf %14, %15 : vector<16x128xf32>
    %17 = arith.truncf %16 : vector<16x128xf32> to vector<16x128xbf16>
    %c0_12 = arith.constant 0 : index
    %c0_13 = arith.constant 0 : index
    %18 = vector.load %arg6[%c0_12, %c0_13] : memref<128x128xbf16, #tpu.memory_space<vmem>>, vector<128x128xbf16>
    %cst_14 = arith.constant dense<0.000000e+00> : vector<16x128xf32>
    %19 = tpu.matmul %17, %18, %cst_14 {dimension_numbers = #tpu.dot_dimension_numbers<[1], [0], [0], [1], [0, 0, 1, 1], [], []>} : vector<16x128xbf16>, vector<128x128xbf16>, vector<16x128xf32> -> vector<16x128xf32>
    %20 = vector.extract_strided_slice %19 {offsets = [0, 0], sizes = [16, 4], strides = [1, 1]} : vector<16x128xf32> to vector<16x4xf32>
    %c0_15 = arith.constant 0 : index
    %c0_16 = arith.constant 0 : index
    %21 = vector.load %arg7[%c0_15, %c0_16] : memref<1x4xf32, #tpu.memory_space<vmem>>, vector<1x4xf32>
    %22 = vector.broadcast %21 : vector<1x4xf32> to vector<16x4xf32>
    %23 = arith.addf %20, %22 : vector<16x4xf32>
    %24 = math.tanh %23 : vector<16x4xf32>
    %c0_17 = arith.constant 0 : index
    %c0_18 = arith.constant 0 : index
    %25 = vector.load %arg8[%c0_17, %c0_18] : memref<16x4xf32, #tpu.memory_space<vmem>>, vector<16x4xf32>
    tpu.vector_store %arg8[%c0_17, %c0_18], %24 {strides = array<i32>} : memref<16x4xf32, #tpu.memory_space<vmem>>, vector<16x4xf32>,
    return
  }
  func.func @transform_0(%arg0: i32) -> (i32, i32) {
    %c0_i32 = arith.constant 0 : i32
    %c0_i32_0 = arith.constant 0 : i32
    return %arg0, %c0_i32 : i32, i32
  }
  func.func @transform_1(%arg0: i32) -> (i32, i32) {
    %c0_i32 = arith.constant 0 : i32
    %c0_i32_0 = arith.constant 0 : i32
    %c0_i32_1 = arith.constant 0 : i32
    return %c0_i32, %c0_i32_0 : i32, i32
  }
  func.func @transform_2(%arg0: i32) -> (i32, i32) {
    %c0_i32 = arith.constant 0 : i32
    %c0_i32_0 = arith.constant 0 : i32
    %c0_i32_1 = arith.constant 0 : i32
    return %c0_i32, %c0_i32_0 : i32, i32
  }
  func.func @transform_3(%arg0: i32) -> (i32, i32) {
    %c0_i32 = arith.constant 0 : i32
    %c0_i32_0 = arith.constant 0 : i32
    %c0_i32_1 = arith.constant 0 : i32
    return %c0_i32, %c0_i32_0 : i32, i32
  }
  func.func @transform_4(%arg0: i32) -> (i32, i32) {
    %c0_i32 = arith.constant 0 : i32
    %c0_i32_0 = arith.constant 0 : i32
    %c0_i32_1 = arith.constant 0 : i32
    return %c0_i32, %c0_i32_0 : i32, i32
  }
  func.func @transform_5(%arg0: i32) -> (i32, i32) {
    %c0_i32 = arith.constant 0 : i32
    %c0_i32_0 = arith.constant 0 : i32
    %c0_i32_1 = arith.constant 0 : i32
    return %c0_i32, %c0_i32_0 : i32, i32
  }
  func.func @transform_6(%arg0: i32) -> (i32, i32) {
    %c0_i32 = arith.constant 0 : i32
    %c0_i32_0 = arith.constant 0 : i32
    %c0_i32_1 = arith.constant 0 : i32
    return %c0_i32, %c0_i32_0 : i32, i32
  }
  func.func @transform_7(%arg0: i32) -> (i32, i32) {
    %c0_i32 = arith.constant 0 : i32
    %c0_i32_0 = arith.constant 0 : i32
    return %arg0, %c0_i32 : i32, i32
  }
}

</mosaic_0001>

<bundles_post_ra>
// kernel: actor_ppo_forward.1
= control target key start
LH: loop header
LB: loop body
LE: loop exit
PB: predicated region body
PF: predicated region fallthrough
CT: control target
= control target key end

     0   :  { %12 = vsyncpa [#allocation3], 0  ;;  %s498_s0 = inlined_call_operand.vmem [shape: f32[16,16], index: 0, kind: input, shape index: {}]   ;;  %s499_s1 = inlined_call_operand.vmem [shape: bf16[16,128], index: 1, kind: input, shape index: {}]   ;;  %s500_s2 = inlined_call_operand.vmem [shape: f32[1,128], index: 2, kind: input, shape index: {}]   ;;  %s501_s3 = inlined_call_operand.hbm [shape: bf16[128,128], index: 3, kind: input, shape index: {}]   ;;  %s502_s4 = inlined_call_operand.vmem [shape: f32[1,128], index: 4, kind: input, shape index: {}]   ;;  %s503_s5 = inlined_call_operand.hbm [shape: bf16[128,128], index: 5, kind: input, shape index: {}]   ;;  %s504_s6 = inlined_call_operand.vmem [shape: f32[1,4], index: 6, kind: input, shape index: {}]   ;;  %s505_s7 = inlined_call_operand.vmem [shape: f32[16,4], index: 7, kind: output, shape index: {}]  }
   0x1   :  { %s24_s26 = sshll.u32 %s501_s3, 4  ;;  %s25_s26 = int_to_ptr.hbm [resolvable:$true] %s24_s26 }
   0x2   :  { %13 = vsyncpa [#allocation5], 0  ;;  %s424_s27 = smov [#allocation2]   ;;  %s39_s8 = sshll.u32 %s503_s5, 4  ;;  %s40_s8 = int_to_ptr.hbm [resolvable:$true] %s39_s8 }
   0x3   :  { %s26_s28 = sshll.u32 %s424_s27, 4  ;;  %s425_s9 = smov 64   ;;  %s27_s28 = int_to_ptr.vmem [resolvable:$true] %s26_s28 }
   0x4   :  { %s426_s10 = smov 4   ;;  %s427_s11 = smov [#allocation4]  }
   0x5   :  { %32 = dma.hbm_to_vmem [thread:$0]  %s25_s26, 1024, %s27_s28, [#allocation3], %s425_s9, %s425_s9, %s426_s10  }
   0x6   :  { %s41_s12 = sshll.u32 %s427_s11, 4  ;;  %s42_s12 = int_to_ptr.vmem [resolvable:$true] %s41_s12 }
   0x7   :  { %47 = dma.hbm_to_vmem [thread:$0]  %s40_s8, 1024, %s42_s12, [#allocation5], %s425_s9, %s425_s9, %s426_s10  }
   0x8   :  { %420 = dma.done.wait [#allocation3], 1024  }
   0x9   :  { %421 = vsyncadd [#allocation3], 4294966272 }
   0xa   :  { %422 = dma.done.wait [#allocation5], 1024  }
   0xb   :  { %423 = vsyncadd [#allocation5], 4294966272  ;;  %v344_v0 = vld [vmem:[%s499_s1] sm:$0xff]  ;;  %v60_v2 = vld [vmem:[%s498_s0 + $0x8] sm:$0xff]  ;;  %vm74_vm0 = vcmask 130048   ;;  %vm266_vm1 = vcmask 31744  }
   0xc   :  { %v59_v1 = vld [vmem:[%s498_s0] sm:$0xff]  ;;  %v352_v4 = vld [vmem:[#allocation2 + $0x38] sm:$0xff]  ;;  %85 = vmatpush.bf16.msra.mxu0 %v344_v0  ;;  %v351_v5 = vld [vmem:[#allocation2 + $0x30] sm:$0xff] }
   0xd   :  { %v61_v3 = vpack.c.bf16 %v60_v2, %v59_v1  ;;  %163 = vmatpush.bf16.msra.mxu1 %v352_v4  ;;  %v350_v6 = vld [vmem:[#allocation2 + $0x28] sm:$0xff]  ;;  %v349_v7 = vld [vmem:[#allocation2 + $0x20] sm:$0xff]  ;;  %v348_v8 = vld [vmem:[#allocation2 + $0x18] sm:$0xff] }
   0xe   :  { %v347_v9 = vld [vmem:[#allocation2 + $0x10] sm:$0xff]  ;;  %v346_v10 = vld [vmem:[#allocation2 + $0x8] sm:$0xff]  ;;  %v345_v11 = vld [vmem:[#allocation2] sm:$0xff] }
   0xf   :  { %279 = vmatmul.msk.bf16.vlgmr.msra.gmra.mxu0 %vm74_vm0, %v61_v3  ;;  %v360_v12 = vld [vmem:[#allocation4 + $0x38] sm:$0xff]  ;;  %v359_v13 = vld [vmem:[#allocation4 + $0x30] sm:$0xff]  ;;  %v358_v14 = vld [vmem:[#allocation4 + $0x28] sm:$0xff] }
  0x10   :  { %244 = vmatpush.bf16.msra.mxu2 %v360_v12  ;;  %v357_v15 = vld [vmem:[#allocation4 + $0x20] sm:$0xff]  ;;  %v356_v24 = vld [vmem:[#allocation4 + $0x18] sm:$0xff]  ;;  %v355_v25 = vld [vmem:[#allocation4 + $0x10] sm:$0xff] }
  0x11   :  { %164 = vmatpush.bf16.msra.mxu1 %v351_v5  ;;  %v365_v17 = vld [vmem:[%s500_s2] ss:$0 sm:$0xff]  ;;  %v354_v26 = vld [vmem:[#allocation4 + $0x8] sm:$0xff] }
  0x12   :  { %v353_v27 = vld [vmem:[#allocation4] sm:$0xff] }
  0x13   :  { %v366_v29 = vld [vmem:[%s502_s4] ss:$0 sm:$0xff] }
  0x14   :  { %245 = vmatpush.bf16.msra.mxu2 %v359_v13  ;;  %v367_v36 = vld [vmem:[%s504_s6] ss:$0 sm:$0xff] }
  0x15   :  { %165 = vmatpush.bf16.msra.mxu1 %v350_v6 }
  0x18   :  { %246 = vmatpush.bf16.msra.mxu2 %v358_v14 }
  0x19   :  { %166 = vmatpush.bf16.msra.mxu1 %v349_v7 }
  0x1c   :  { %247 = vmatpush.bf16.msra.mxu2 %v357_v15 }
  0x1d   :  { %167 = vmatpush.bf16.msra.mxu1 %v348_v8 }
  0x20   :  { %248 = vmatpush.bf16.msra.mxu2 %v356_v24 }
  0x21   :  { %168 = vmatpush.bf16.msra.mxu1 %v347_v9 }
  0x24   :  { %249 = vmatpush.bf16.msra.mxu2 %v355_v25 }
  0x25   :  { %169 = vmatpush.bf16.msra.mxu1 %v346_v10 }
  0x28   :  { %250 = vmatpush.bf16.msra.mxu2 %v354_v26 }
  0x29   :  { %170 = vmatpush.bf16.msra.mxu1 %v345_v11 }
  0x2c   :  { %251 = vmatpush.bf16.msra.mxu2 %v353_v27 }
  0x8c   :  { %v87_v16 = vpop.f32.mrf.mxu0 }
  0x8d   :  { %v88_v18 = vadd.f32 %v365_v17, %v87_v16 }
  0x8f   :  { %v92_v21 = vmax.f32 %v88_v18, 0.0 }
  0x94   :  { %v89_v19 = vpop.f32.mrf.mxu0 }
  0x95   :  { %v90_v20 = vadd.f32 %v365_v17, %v89_v19 }
  0x97   :  { %v93_v22 = vmax.f32 %v90_v20, 0.0 }
  0x99   :  { %v94_v23 = vpack.c.bf16 %v93_v22, %v92_v21 }
  0x9b   :  { %171 = vmatmul.bf16.vlgmr.msra.gmra.mxu1 %v94_v23 }
 0x118   :  { %v172_v28 = vpop.f32.mrf.mxu1 }
 0x119   :  { %v173_v30 = vadd.f32 %v366_v29, %v172_v28 }
 0x11b   :  { %v177_v33 = vmax.f32 %v173_v30, 0.0 }
 0x120   :  { %v174_v31 = vpop.f32.mrf.mxu1 }
 0x121   :  { %v175_v32 = vadd.f32 %v366_v29, %v174_v31 }
 0x123   :  { %v178_v34 = vmax.f32 %v175_v32, 0.0 }
 0x125   :  { %v179_v35 = vpack.c.bf16 %v178_v34, %v177_v33 }
 0x127   :  { %252 = vmatmul.bf16.vlgmr.msra.gmra.mxu2 %v179_v35 }
 0x1aa   :  { %v253_v37 = vpop.f32.mrf.mxu2 }
 0x1ab   :  { %v262_v38 = vadd.f32 %v367_v36, %v253_v37 }
 0x1ad   :  { %368 = vtanh.f32 %v262_v38 }
 0x1b2   :  { %v255_v39 = vpop.f32.mrf.mxu2 }
 0x1b3   :  { %v369_v40 = vpop.eup %368  ;;  %v263_v41 = vadd.f32 %v367_v36, %v255_v39 }
 0x1b4   :  { %267 = vst.msk [vmem:[%s505_s7] sm:$0xff] %vm266_vm1, %v369_v40 }
 0x1b5   :  { %370 = vtanh.f32 %v263_v41 }
 0x1bb   :  { %v371_v42 = vpop.eup %370 }
 0x1bc   :  { %268 = vst.msk [vmem:[%s505_s7 + $0x8] sm:$0xff] %vm266_vm1, %v371_v42 }
 0x1bd   :  { %273 = vsyncpa [#allocation3], 1 }
 0x1be   :  { %274 = vsyncpa [#allocation5], 1 }

</bundles_post_ra>
